<compile_context>
chip_gen: v7x
topology: tpu7x:2x2x1
jax: 0.10.0
libtpu: 0.0.40
codegen_flags: <defaults>
</compile_context>

<pallas_src>
import math

import jax
import jax.numpy as jnp
from jax.experimental import pallas as pl
from jax.experimental.pallas import tpu as pltpu


def _num_embed_kernel(col_ref, x_ref, bias_ref, o_ref):
    # col_ref : (C, H)      per-column embeddings (grid-invariant)
    # x_ref   : (TB, C, 1)  numeric values for this batch tile
    # bias_ref: (1, H)      bias (grid-invariant)
    # o_ref   : (TB, C, H)  output tile
    col = col_ref[...].astype(jnp.float32)            # (C, H)
    x = x_ref[...].astype(jnp.float32)                # (TB, C, 1) -> lane broadcast
    bias = bias_ref[...]                              # (1, H) -> broadcasts over (TB, C)
    o_ref[...] = (x * col[None, :, :] + bias).astype(o_ref.dtype)


# Total VMEM target for all pipelined buffers; kept <= the 32 MiB scoped limit
# requested below (safe on v7x, and above v5e's 16 MiB default).
_VMEM_BUDGET_BYTES = 26 * 1024 * 1024
_VMEM_LIMIT_BYTES = 32 * 1024 * 1024


def _pick_batch_tile(B, C, H):
    """Largest batch tile whose double-buffered blocks fit the VMEM budget."""
    # Per batch row (double-buffered): output block (C*H f32) + x block (C f32).
    per_row = 2 * (C * H * 4 + C * 4)
    # Grid-invariant inputs (still double-buffered by the default pipeline).
    fixed = 2 * (C * H * 4 + H * 4)
    tb = max(1, (_VMEM_BUDGET_BYTES - fixed) // per_row)
    return int(min(B, tb))


def cm2_num_embedding(num_col_emb, x_num_ts, num_bias):
    """num_col_emb: (C, H), x_num_ts: (B, C), num_bias: (1, 1, H) -> (B, C, H) f32."""
    C, H = num_col_emb.shape
    B = x_num_ts.shape[0]

    # Free metadata reshapes done in the wrapper (no in-kernel relayout needed).
    x3 = x_num_ts.reshape(B, C, 1)      # C on sublanes, lane-size-1 scale column
    bias2d = num_bias.reshape(1, H)

    tb = _pick_batch_tile(B, C, H)
    grid = (pl.cdiv(B, tb),)

    return pl.pallas_call(
        _num_embed_kernel,
        out_shape=jax.ShapeDtypeStruct((B, C, H), jnp.float32),
        grid=grid,
        in_specs=[
            pl.BlockSpec((C, H), lambda b: (0, 0)),          # column embeddings (constant)
            pl.BlockSpec((tb, C, 1), lambda b: (b, 0, 0)),   # numeric values, batch tile
            pl.BlockSpec((1, H), lambda b: (0, 0)),          # bias (constant)
        ],
        out_specs=pl.BlockSpec((tb, C, H), lambda b: (b, 0, 0)),
        compiler_params=pltpu.CompilerParams(
            dimension_semantics=("parallel",),               # shard batch across TCs (v7x)
            vmem_limit_bytes=_VMEM_LIMIT_BYTES,
        ),
    )(num_col_emb, x3, bias2d)


def reference(num_col_emb, x_num_ts, num_bias):
    out = (num_col_emb[None, :, :] * x_num_ts[:, :, None].astype(jnp.float32)
           + num_bias)
    return out.astype(jnp.float32)


if __name__ == "__main__":
    batch, num_cols, hidden = 2, 8, 32

    key = jax.random.PRNGKey(0)
    k1, k2, k3 = jax.random.split(key, 3)

    num_col_emb = jax.random.normal(k1, (num_cols, hidden), dtype=jnp.float32)
    x_num_ts = jax.random.normal(k2, (batch, num_cols), dtype=jnp.float32)

    # Deterministic init of num_bias: uniform(-1/sqrt(H), 1/sqrt(H)), shape (1,1,H)
    bound = 1.0 / math.sqrt(hidden)
    num_bias = jax.random.uniform(
        k3, (1, 1, hidden), minval=-bound, maxval=bound, dtype=jnp.float32
    )

    out = cm2_num_embedding(num_col_emb, x_num_ts, num_bias)
    out = jax.block_until_ready(out)

    ref = reference(num_col_emb, x_num_ts, num_bias)
    assert out.shape == (batch, num_cols, hidden)
    assert jnp.allclose(out, ref, atol=1e-6, rtol=1e-6)

    print("KERNEL_OK")
</pallas_src>

<mosaic_0001>
module attributes {stable_mosaic.version = 11 : i64} {
  func.func @_num_embed_kernel(%arg0: i32, %arg1: memref<8x32xf32, #tpu.memory_space<vmem>>, %arg2: memref<2x8x1xf32, #tpu.memory_space<vmem>>, %arg3: memref<1x32xf32, #tpu.memory_space<vmem>>, %arg4: memref<2x8x32xf32, #tpu.memory_space<vmem>>) attributes {dimension_semantics = [#tpu.dimension_semantics<parallel>], iteration_bounds = array<i64: 1>, scalar_prefetch = 0 : i64, scratch_operands = 0 : i64, tpu.core_type = #tpu.core_type<tc>, window_params = [{pipeline_mode = #tpu.pipeline_mode<synchronous>, transform_indices = @transform_0, window_bounds = array<i64: 8, 32>}, {transform_indices = @transform_1, window_bounds = array<i64: 2, 8, 1>}, {pipeline_mode = #tpu.pipeline_mode<synchronous>, transform_indices = @transform_2, window_bounds = array<i64: 1, 32>}, {transform_indices = @transform_3, window_bounds = array<i64: 2, 8, 32>}]} {
    %c0 = arith.constant 0 : index
    %c0_0 = arith.constant 0 : index
    %0 = vector.load %arg1[%c0, %c0_0] : memref<8x32xf32, #tpu.memory_space<vmem>>, vector<8x32xf32>
    %c0_1 = arith.constant 0 : index
    %c0_2 = arith.constant 0 : index
    %c0_3 = arith.constant 0 : index
    %1 = vector.load %arg2[%c0_1, %c0_2, %c0_3] : memref<2x8x1xf32, #tpu.memory_space<vmem>>, vector<2x8x1xf32>
    %c0_4 = arith.constant 0 : index
    %c0_5 = arith.constant 0 : index
    %2 = vector.load %arg3[%c0_4, %c0_5] : memref<1x32xf32, #tpu.memory_space<vmem>>, vector<1x32xf32>
    %3 = vector.shape_cast %0 : vector<8x32xf32> to vector<1x8x32xf32>
    %4 = vector.broadcast %1 : vector<2x8x1xf32> to vector<2x8x32xf32>
    %5 = vector.broadcast %3 : vector<1x8x32xf32> to vector<2x8x32xf32>
    %6 = arith.mulf %4, %5 : vector<2x8x32xf32>
    %7 = vector.shape_cast %2 : vector<1x32xf32> to vector<1x1x32xf32>
    %8 = vector.broadcast %7 : vector<1x1x32xf32> to vector<2x8x32xf32>
    %9 = arith.addf %6, %8 : vector<2x8x32xf32>
    %c0_6 = arith.constant 0 : index
    %c0_7 = arith.constant 0 : index
    %c0_8 = arith.constant 0 : index
    %10 = vector.load %arg4[%c0_6, %c0_7, %c0_8] : memref<2x8x32xf32, #tpu.memory_space<vmem>>, vector<2x8x32xf32>
    tpu.vector_store %arg4[%c0_6, %c0_7, %c0_8], %9 {strides = array<i32>} : memref<2x8x32xf32, #tpu.memory_space<vmem>>, vector<2x8x32xf32>,
    return
  }
  func.func @transform_0(%arg0: i32) -> (i32, i32) {
    %c0_i32 = arith.constant 0 : i32
    %c0_i32_0 = arith.constant 0 : i32
    %c0_i32_1 = arith.constant 0 : i32
    return %c0_i32, %c0_i32_0 : i32, i32
  }
  func.func @transform_1(%arg0: i32) -> (i32, i32, i32) {
    %c0_i32 = arith.constant 0 : i32
    %c0_i32_0 = arith.constant 0 : i32
    %c0_i32_1 = arith.constant 0 : i32
    return %arg0, %c0_i32, %c0_i32_0 : i32, i32, i32
  }
  func.func @transform_2(%arg0: i32) -> (i32, i32) {
    %c0_i32 = arith.constant 0 : i32
    %c0_i32_0 = arith.constant 0 : i32
    %c0_i32_1 = arith.constant 0 : i32
    return %c0_i32, %c0_i32_0 : i32, i32
  }
  func.func @transform_3(%arg0: i32) -> (i32, i32, i32) {
    %c0_i32 = arith.constant 0 : i32
    %c0_i32_0 = arith.constant 0 : i32
    %c0_i32_1 = arith.constant 0 : i32
    return %arg0, %c0_i32, %c0_i32_0 : i32, i32, i32
  }
}

</mosaic_0001>

<bundles_post_ra>
// kernel: tpu_custom_call.1
= control target key start
LH: loop header
LB: loop body
LE: loop exit
PB: predicated region body
PF: predicated region fallthrough
CT: control target
= control target key end

     0   :  { %v88_v1 = vmov 0   ;;  %s136_s0 = inlined_call_operand.vmem [shape: f32[8,32], index: 0, kind: input, shape index: {}]   ;;  %s137_s1 = inlined_call_operand.vmem [shape: f32[2,8,1], index: 1, kind: input, shape index: {}]   ;;  %s138_s2 = inlined_call_operand.vmem [shape: f32[1,32], index: 2, kind: input, shape index: {}]   ;;  %s139_s3 = inlined_call_operand.hbm [shape: f32[2,8,32], index: 3, kind: output, shape index: {}]  }
   0x1   :  { %v16_v0 = vld [vmem:[%s137_s1] sm:$0xff]  ;;  %63 = vset.pattern.permute.xlu0 %v88_v1 }
   0x2   :  { %8 = vsyncpa [#allocation3], 0  ;;  %21 = vperm.xlu0 %63, %v16_v0   ;;  %v17_v2 = vld [vmem:[%s137_s1 + $0x8] sm:$0xff]  ;;  %v15_v3 = vld [vmem:[%s136_s0] sm:$0xff]  ;;  %vm39_vm0 = vcmask 261120   ;;  %s89_s20 = smov [#allocation2]  }
   0x3   :  { %v58_v4 = vld [vmem:[%s138_s2] ss:$0 sm:$0xff]  ;;  %s47_s21 = sshll.u32 %s89_s20, 4  ;;  %s48_s21 = int_to_ptr.vmem [resolvable:$true] %s47_s21 }
   0x4   :  { %s64_s1 = scalar_lea.vmem %s48_s21, 256  ;;  %p69_p1 = scmp.lt.s32.totalorder %s48_s21, %s48_s21 }
   0x5   :  { %p65_p0 = scmp.ne.s32.totalorder %s48_s21, %s64_s1  ;;  %p70_p2 = scmp.lt.s32.totalorder %s64_s1, %s64_s1 }
   0x6   :  { %26 = vperm.xlu0 %63, %v17_v2  }
   0x7   :  { %p71_p3 = por %p70_p2, %p69_p1 }
   0x9   :  { %p72_p4 = pnand %p71_p3, %p65_p0 }
  0x81   :  { %v22_v5 = vpop.permute.xlu0 %21 }
  0x82   :  { %v29_v6 = vmul.f32 %v22_v5, %v15_v3 }
  0x84   :  { %v37_v7 = vadd.f32 %v58_v4, %v29_v6 }
  0x85   :  { %v27_v8 = vpop.permute.xlu0 %26 }
  0x86   :  { %40 = vst.msk [vmem:[#allocation2] sm:$0xff] %vm39_vm0, %v37_v7  ;;  %v30_v9 = vmul.f32 %v27_v8, %v15_v3 }
  0x88   :  { %v38_v10 = vadd.f32 %v58_v4, %v30_v9 }
  0x8a   :  { %41 = vst.msk [vmem:[#allocation2 + $0x8] sm:$0xff] %vm39_vm0, %v38_v10 }
  0x8b   :  { %75 = shalt.err (!%p72_p4)
}
  0x8c   :  { %s76_s22 = scalar_lea.hbm %s139_s3, 256 }
  0x8d   :  { %p77_p5 = scmp.ne.s32.totalorder %s139_s3, %s76_s22  ;;  %p80_p6 = scmp.lt.u32.totalorder %s76_s22, %s139_s3 }
  0x8f   :  { %p82_p7 = pnand %p80_p6, %p77_p5 }
  0x91   :  { %85 = shalt.err (!%p82_p7)
}
  0x92   :  { %s90_s27 = smov 128   ;;  %s91_s28 = smov 8  }
  0x93   :  { %53 = dma.vmem_to_hbm [thread:$0]  %s48_s21, 256, %s139_s3, [#allocation3], %s90_s27, %s90_s27, %s91_s28  }
  0x94   :  { %86 = dma.done.wait [#allocation3], 256  }
  0x95   :  { %87 = vsyncadd [#allocation3], 4294967040 }
  0x96   :  { %57 = vsyncpa [#allocation3], 1 }

</bundles_post_ra>
